<compile_context>
chip_gen: v5e
topology: v5e:2x2
jax: 0.10.0
libtpu: 0.0.40
codegen_flags: <defaults>
</compile_context>

<pallas_src>
import jax
import jax.numpy as jnp
from jax.experimental import pallas as pl
from jax.experimental.pallas import tpu as pltpu

LANES = 128
ROW_BLOCK = 1024          # 1024 x 128 x 4B = 512 KiB per f32 block (in + out
                          # double-buffered ~= 2 MiB VMEM: fine on v5e/v6e/v7x)

SQRT2 = 1.4142135623730951
LN2 = 0.6931471805599453


def _root2sigmoid_kernel(z_ref, o_ref):
    # Compute in f32 regardless of storage dtype (bf16 transcendentals are
    # promoted on v5e anyway; on v6e/v7x this is still HBM-bound so it's free).
    z = z_ref[...].astype(jnp.float32)
    e = jnp.exp(-jnp.abs(z) * LN2)        # = 2^(-|z|), in (0, 1]; no overflow
    num = (SQRT2 * z) * e
    den = 1.0 + e * e                      # in (1, 2]
    o_ref[...] = (num / den).astype(o_ref.dtype)


def root2sigmoid(z: jax.Array) -> jax.Array:
    """Elementwise Root2sigmoid, any input shape."""
    orig_shape = z.shape

    flat = z.reshape(-1)
    n = flat.shape[0]

    # Pad only to a lane multiple (128), not to a full tile; skipped entirely
    # when n is already lane-aligned (e.g. 2*4*16*16 = 2048).
    n_pad = pl.cdiv(n, LANES) * LANES
    padded = n_pad != n
    if padded:
        flat = jnp.pad(flat, (0, n_pad - n))

    rows = n_pad // LANES
    z2d = flat.reshape(rows, LANES)        # lane-dense slab, metadata-only

    # Big streaming tiles; shrink to the full array when it is small (a block
    # equal to the full dim is always legal, even if not a multiple of 8).
    row_block = min(ROW_BLOCK, rows)
    grid = (pl.cdiv(rows, row_block),)

    out2d = pl.pallas_call(
        _root2sigmoid_kernel,
        out_shape=jax.ShapeDtypeStruct((rows, LANES), z.dtype),
        grid_spec=pltpu.PrefetchScalarGridSpec(
            num_scalar_prefetch=0,
            grid=grid,
            in_specs=[pl.BlockSpec((row_block, LANES), lambda i: (i, 0))],
            out_specs=pl.BlockSpec((row_block, LANES), lambda i: (i, 0)),
        ),
        compiler_params=pltpu.CompilerParams(
            # Shards the row axis across the two TensorCores on v7x;
            # harmless elsewhere.
            dimension_semantics=("parallel",),
        ),
    )(z2d)

    out = out2d.reshape(-1)
    if padded:
        out = out[:n]
    return out.reshape(orig_shape)


if __name__ == "__main__":
    key = jax.random.PRNGKey(0)

    # Example input consistent with "any shape": NCHW (2, 4, 16, 16)
    x = jax.random.normal(key, (2, 4, 16, 16), dtype=jnp.float32)

    y = jax.block_until_ready(root2sigmoid(x))

    # Pure-JAX reference matching the PyTorch formula exactly:
    #   sqrt(2)*z / (sqrt(2^(-2z)) + sqrt(2^(2z)))
    sqrt2 = jnp.sqrt(jnp.float32(2.0))
    denom = (jnp.sqrt(jnp.power(jnp.float32(2.0), -2.0 * x))
             + jnp.sqrt(jnp.power(jnp.float32(2.0), 2.0 * x)))
    y_ref = sqrt2 * x / denom

    assert y.shape == x.shape
    assert jnp.allclose(y, y_ref, atol=1e-5, rtol=1e-5)

    print("KERNEL_OK")
</pallas_src>

<mosaic_0001>
module attributes {stable_mosaic.version = 11 : i64} {
  func.func @_root2sigmoid_kernel(%arg0: i32, %arg1: memref<16x128xf32, #tpu.memory_space<vmem>>, %arg2: memref<16x128xf32, #tpu.memory_space<vmem>>) attributes {dimension_semantics = [#tpu.dimension_semantics<parallel>], iteration_bounds = array<i64: 1>, scalar_prefetch = 0 : i64, scratch_operands = 0 : i64, tpu.core_type = #tpu.core_type<tc>, window_params = [{transform_indices = @transform_0, window_bounds = array<i64: 16, 128>}, {transform_indices = @transform_1, window_bounds = array<i64: 16, 128>}]} {
    %c0 = arith.constant 0 : index
    %c0_0 = arith.constant 0 : index
    %0 = vector.load %arg1[%c0, %c0_0] : memref<16x128xf32, #tpu.memory_space<vmem>>, vector<16x128xf32>
    %1 = math.absf %0 : vector<16x128xf32>
    %cst = arith.constant 0.000000e+00 : f32
    %2 = vector.broadcast %cst : f32 to vector<16x128xf32>
    %3 = arith.subf %2, %1 : vector<16x128xf32>
    %cst_1 = arith.constant 0.693147182 : f32
    %4 = vector.broadcast %cst_1 : f32 to vector<16x128xf32>
    %5 = arith.mulf %3, %4 : vector<16x128xf32>
    %6 = math.exp %5 : vector<16x128xf32>
    %cst_2 = arith.constant 1.41421354 : f32
    %7 = vector.broadcast %cst_2 : f32 to vector<16x128xf32>
    %8 = arith.mulf %7, %0 : vector<16x128xf32>
    %9 = arith.mulf %8, %6 : vector<16x128xf32>
    %10 = arith.mulf %6, %6 : vector<16x128xf32>
    %cst_3 = arith.constant 1.000000e+00 : f32
    %11 = vector.broadcast %cst_3 : f32 to vector<16x128xf32>
    %12 = arith.addf %11, %10 : vector<16x128xf32>
    %13 = arith.divf %9, %12 : vector<16x128xf32>
    %c0_4 = arith.constant 0 : index
    %c0_5 = arith.constant 0 : index
    %14 = vector.load %arg2[%c0_4, %c0_5] : memref<16x128xf32, #tpu.memory_space<vmem>>, vector<16x128xf32>
    tpu.vector_store %arg2[%c0_4, %c0_5], %13 {strides = array<i32>} : memref<16x128xf32, #tpu.memory_space<vmem>>, vector<16x128xf32>,
    return
  }
  func.func @transform_0(%arg0: i32) -> (i32, i32) {
    %c0_i32 = arith.constant 0 : i32
    %c0_i32_0 = arith.constant 0 : i32
    return %arg0, %c0_i32 : i32, i32
  }
  func.func @transform_1(%arg0: i32) -> (i32, i32) {
    %c0_i32 = arith.constant 0 : i32
    %c0_i32_0 = arith.constant 0 : i32
    return %arg0, %c0_i32 : i32, i32
  }
}

</mosaic_0001>

<bundles_post_ra>
// kernel: tpu_custom_call.1
= control target key start
LH: loop header
LB: loop body
LE: loop exit
PB: predicated region body
PF: predicated region fallthrough
CT: control target
= control target key end

     0   :  { %6 = vsyncpa [#allocation3], 0  ;;  %s192_s0 = inlined_call_operand.hbm [shape: f32[16,128], index: 0, kind: input, shape index: {}]   ;;  %s193_s1 = inlined_call_operand.hbm [shape: f32[16,128], index: 1, kind: output, shape index: {}]  }
   0x1   :  { %7 = vsyncpa [#allocation4], 0  ;;  %s12_s8 = sshll.u32 %s192_s0, 4  ;;  %s160_s9 = smov [#allocation2]   ;;  %s13_s8 = int_to_ptr.hbm [resolvable:$true] %s12_s8 }
   0x2   :  { %s14_s10 = sshll.u32 %s160_s9, 4  ;;  %s161_s11 = smov 128   ;;  %s15_s10 = int_to_ptr.vmem [resolvable:$true] %s14_s10 }
   0x3   :  { %s162_s12 = smov 8  }
   0x4   :  { %20 = dma.hbm_to_vmem [thread:$0]  %s13_s8, 256, %s15_s10, [#allocation3], %s161_s11, %s161_s11, %s162_s12  }
   0x5   :  { %156 = dma.done.wait [#allocation3], 256  }
   0x6   :  { %157 = vsyncadd [#allocation3], 4294967040  ;;  %v25_v0 = vld [vmem:[#allocation2] sm:$0xff]  ;;  %v26_v1 = vld [vmem:[#allocation2 + $0x8] sm:$0xff]  ;;  %s163_s0 = smov [#allocation5]   ;;  %s83_s16 = sshll.u32 %s193_s1, 4  ;;  %s84_s16 = int_to_ptr.hbm [resolvable:$true] %s83_s16 }
   0x7   :  { %v27_v2 = vand.u32 2147483647, %v25_v0  ;;  %v28_v3 = vand.u32 2147483647, %v26_v1  ;;  %v37_v18 = vmul.f32 1.4142135, %v25_v0 }
   0x8   :  { %v38_v21 = vmul.f32 1.4142135, %v26_v1  ;;  %s81_s13 = sshll.u32 %s163_s0, 4  ;;  %s82_s13 = int_to_ptr.vmem [resolvable:$true] %s81_s13 }
   0x9   :  { %v29_v4 = vsub.f32 0.0, %v27_v2  ;;  %v30_v5 = vsub.f32 0.0, %v28_v3 }
   0xb   :  { %v31_v6 = vmul.f32 0.6931472, %v29_v4  ;;  %v32_v7 = vmul.f32 0.6931472, %v30_v5 }
   0xd   :  { %v33_v8 = vmul.f32 1.442695, %v31_v6  ;;  %v35_v9 = vmul.f32 1.442695, %v32_v7 }
   0xf   :  { %100 = vpow2.f32 %v33_v8 }
  0x10   :  { %102 = vpow2.f32 %v35_v9 }
  0x15   :  { %v101_v10 = vpop.eup %100 }
  0x16   :  { %v103_v11 = vpop.eup %102  ;;  %v41_v12 = vmul.f32 %v101_v10, %v101_v10  ;;  %v39_v32 = vmul.f32 %v101_v10, %v37_v18 }
  0x17   :  { %v42_v13 = vmul.f32 %v103_v11, %v103_v11  ;;  %v40_v35 = vmul.f32 %v103_v11, %v38_v21 }
  0x18   :  { %v43_v14 = vadd.f32 1.0, %v41_v12 }
  0x19   :  { %v44_v15 = vadd.f32 1.0, %v42_v13 }
  0x1a   :  { %104 = vrcp.f32 %v43_v14  ;;  %vm50_vm0 = vweird.f32 %v43_v14  ;;  %v56_v20 = vand.u32 2147483648, %v43_v14  ;;  %v54_v24 = vand.u32 2147483647, %v43_v14 }
  0x1b   :  { %106 = vrcp.f32 %v44_v15  ;;  %v71_v25 = vand.u32 2147483648, %v44_v15  ;;  %vm65_vm2 = vweird.f32 %v44_v15  ;;  %v69_v27 = vand.u32 2147483647, %v44_v15 }
  0x1c   :  { %v57_v30 = vor.u32 1.1754944e-38, %v56_v20  ;;  %vm55_vm5 = vcmp.eq.f32.partialorder %v54_v24, 8.507059e+37 }
  0x1d   :  { %v72_v34 = vor.u32 1.1754944e-38, %v71_v25  ;;  %vm70_vm7 = vcmp.eq.f32.partialorder %v69_v27, 8.507059e+37 }
  0x20   :  { %v105_v16 = vpop.eup %104 }
  0x21   :  { %v107_v17 = vpop.eup %106  ;;  %v46_v19 = vmul.f32 %v105_v16, %v43_v14  ;;  %vm51_vm1 = vweird.f32 %v105_v16 }
  0x22   :  { %v61_v22 = vmul.f32 %v107_v17, %v44_v15  ;;  %vm66_vm3 = vweird.f32 %v107_v17  ;;  %vm180_vm4 = vmor %vm50_vm0, %vm51_vm1 }
  0x23   :  { %v47_v23 = vsub.f32 1.0, %v46_v19  ;;  %vm67_vm6 = vmor %vm65_vm2, %vm66_vm3 }
  0x24   :  { %v62_v26 = vsub.f32 1.0, %v61_v22 }
  0x25   :  { %v48_v28 = vmul.f32 %v105_v16, %v47_v23 }
  0x26   :  { %v63_v31 = vmul.f32 %v107_v17, %v62_v26 }
  0x27   :  { %v49_v33 = vadd.f32 %v105_v16, %v48_v28 }
  0x28   :  { %v64_v36 = vadd.f32 %v107_v17, %v63_v31 }
  0x29   :  { %v53_v37 = vsel %vm180_vm4, %v105_v16, %v49_v33 }
  0x2a   :  { %v58_v38 = vsel %vm55_vm5, %v57_v30, %v53_v37  ;;  %v68_v39 = vsel %vm67_vm6, %v107_v17, %v64_v36 }
  0x2b   :  { %v59_v40 = vmul.f32 %v58_v38, %v39_v32  ;;  %v73_v41 = vsel %vm70_vm7, %v72_v34, %v68_v39 }
  0x2c   :  { %v74_v42 = vmul.f32 %v73_v41, %v40_v35 }
  0x2d   :  { %75 = vst [vmem:[#allocation5] sm:$0xff] %v59_v40 }
  0x2e   :  { %76 = vst [vmem:[#allocation5 + $0x8] sm:$0xff] %v74_v42 }
  0x2f   :  { %89 = dma.vmem_to_hbm [thread:$0]  %s82_s13, 256, %s84_s16, [#allocation4], %s161_s11, %s161_s11, %s162_s12  }
  0x30   :  { %158 = dma.done.wait [#allocation4], 256  }
  0x31   :  { %159 = vsyncadd [#allocation4], 4294967040 }
  0x32   :  { %94 = vsyncpa [#allocation3], 1 }
  0x33   :  { %95 = vsyncpa [#allocation4], 1 }

</bundles_post_ra>
